<compile_context>
chip_gen: v5e
topology: v5e:2x2
jax: 0.10.0
libtpu: 0.0.40
codegen_flags: <defaults>
</compile_context>

<pallas_src>
import functools

import jax
import jax.numpy as jnp
from jax import lax
from jax.experimental import pallas as pl
from jax.experimental.pallas import tpu as pltpu

MARGIN = 0.7
EPS = 1e-8  # F.cosine_similarity default eps


def _triplet_loss_kernel(a_ref, p_ref, n_ref, out_ref, acc_ref, *,
                         margin, eps, batch, tile_b, steps_per_core,
                         needs_mask):
    c = pl.program_id(0)           # core / partial index ("parallel")
    i = pl.program_id(1)           # batch-block sweep    ("arbitrary")
    last_i = pl.num_programs(1) - 1

    @pl.when(i == 0)
    def _init():
        acc_ref[...] = jnp.zeros_like(acc_ref)
        out_ref[0, 0] = 0.0

    # Upcast to f32 (mandatory on v5e: no bf16 VPU/EUP path; cheap elsewhere).
    a = a_ref[...].astype(jnp.float32)
    p = p_ref[...].astype(jnp.float32)
    n = n_ref[...].astype(jnp.float32)

    # Per-row squared norms and dot products (lane-axis reductions). (TB, 1)
    ss_a = jnp.sum(a * a, axis=1, keepdims=True)
    ss_p = jnp.sum(p * p, axis=1, keepdims=True)
    ss_n = jnp.sum(n * n, axis=1, keepdims=True)
    dot_ap = jnp.sum(a * p, axis=1, keepdims=True)
    dot_an = jnp.sum(a * n, axis=1, keepdims=True)

    eps2 = eps * eps
    # cos = dot / (max(||x||,eps) * max(||y||,eps)) via a single rsqrt (EUP).
    cos_ap = dot_ap * lax.rsqrt(jnp.maximum(ss_a, eps2) * jnp.maximum(ss_p, eps2))
    cos_an = dot_an * lax.rsqrt(jnp.maximum(ss_a, eps2) * jnp.maximum(ss_n, eps2))

    # (1 - cos_ap) - (1 - cos_an) + margin == cos_an - cos_ap + margin
    hinge = jnp.maximum(cos_an - cos_ap + margin, 0.0)  # (TB, 1)

    if needs_mask:
        # Ragged last tile / clamped duplicate blocks: zero rows >= true B.
        step = c * steps_per_core + i
        row = step * tile_b + lax.broadcasted_iota(jnp.int32, hinge.shape, 0)
        hinge = jnp.where(row < batch, hinge, 0.0)

    # Defer the full cross-lane reduce: accumulate per-row partials in VMEM.
    acc_ref[...] += hinge

    @pl.when(i == last_i)
    def _finalize():
        out_ref[0, 0] = jnp.sum(acc_ref[...])


def _round_up(x, m):
    return ((x + m - 1) // m) * m


def _vmem_limit_bytes():
    """Per-generation scoped-VMEM request: ~96 MiB on 128-MiB chips
    (v5e/v6e), ~44 MiB on 64-MiB v7x. Conservative fallback if unknown."""
    cap = None
    try:
        cap = getattr(pltpu.get_tpu_info(), "vmem_capacity_bytes", None)
    except Exception:
        cap = None
    if cap is None or cap <= 64 * 1024 * 1024:
        return 44 * 1024 * 1024
    return 96 * 1024 * 1024


def _choose_tile_b(B, D, itemsize, vmem_limit):
    """Largest sublane-aligned batch tile whose double-buffered inputs +
    f32 upcast temporaries + accumulator fit the VMEM budget."""
    d_pad = _round_up(max(D, 1), 128)       # lane padding
    per_row = 3 * 2 * d_pad * itemsize      # 3 inputs, double-buffered
    per_row += 4 * d_pad * 4                # f32 upcast / compute temporaries
    per_row += 128 * 4                      # (TB,1) accumulator row, lane-padded
    usable = vmem_limit - 8 * 1024 * 1024   # compiler-internal headroom
    tb = max(8, usable // per_row)
    tb = max(8, (tb // 8) * 8)
    if tb >= B:
        return B
    return tb


def triplet_loss_cosine(anchor, positive, negative, margin=MARGIN, *, tile_b=None):
    """Pallas implementation of TripletLossCosine.forward. Returns scalar f32."""
    assert anchor.shape == positive.shape == negative.shape
    assert anchor.ndim == 2
    B, D = anchor.shape
    itemsize = jnp.dtype(anchor.dtype).itemsize

    vmem_limit = _vmem_limit_bytes()
    if tile_b is None:
        tile_b = _choose_tile_b(B, D, itemsize, vmem_limit)
    tile_b = min(int(tile_b), B)
    if tile_b < B:
        tile_b = max(8, (tile_b // 8) * 8)   # (8,128) rule: row tile multiple of 8
    grid_b = pl.cdiv(B, tile_b)

    # Split the batch sweep across 2 TensorCores on v7x via a leading
    # "parallel" axis with per-core partial sums; harmless on 1-TC v5e/v6e.
    nc = 2 if grid_b >= 2 else 1
    spc = pl.cdiv(grid_b, nc)                # blocks per core
    needs_mask = (B % tile_b != 0) or (nc * spc != grid_b)

    def in_map(c, i):
        # Clamp so a core's padded tail re-reads the last valid block; its
        # contribution is zeroed by the global-row mask in the kernel.
        return (jnp.minimum(c * spc + i, grid_b - 1), 0)

    kernel = functools.partial(
        _triplet_loss_kernel,
        margin=float(margin), eps=EPS, batch=B, tile_b=tile_b,
        steps_per_core=spc, needs_mask=needs_mask)

    cost = pl.CostEstimate(
        flops=10 * B * D,
        transcendentals=2 * B,
        bytes_accessed=3 * B * D * itemsize + nc * 4,
    )

    partials = pl.pallas_call(
        kernel,
        out_shape=jax.ShapeDtypeStruct((nc, 1), jnp.float32),
        grid=(nc, spc),
        in_specs=[
            pl.BlockSpec((tile_b, D), in_map),
            pl.BlockSpec((tile_b, D), in_map),
            pl.BlockSpec((tile_b, D), in_map),
        ],
        # Per-core scalar partial sums live in SMEM.
        out_specs=pl.BlockSpec((1, 1), lambda c, i: (c, 0),
                               memory_space=pltpu.SMEM),
        scratch_shapes=[pltpu.VMEM((tile_b, 1), jnp.float32)],
        compiler_params=pltpu.CompilerParams(
            dimension_semantics=("parallel", "arbitrary"),
            vmem_limit_bytes=vmem_limit,
        ),
        cost_estimate=cost,
    )(anchor, positive, negative)
    return jnp.sum(partials) * (1.0 / B)


def _reference(anchor, positive, negative, margin=MARGIN):
    # Pure-JAX reference mirroring F.cosine_similarity semantics.
    a = anchor.astype(jnp.float32)
    p = positive.astype(jnp.float32)
    n = negative.astype(jnp.float32)

    def cos(x, y):
        nx = jnp.maximum(jnp.linalg.norm(x, axis=1), EPS)
        ny = jnp.maximum(jnp.linalg.norm(y, axis=1), EPS)
        return jnp.sum(x * y, axis=1) / (nx * ny)

    dp = 1.0 - cos(a, p)
    dn = 1.0 - cos(a, n)
    return jnp.mean(jnp.maximum(dp - dn + margin, 0.0))


if __name__ == "__main__":
    key = jax.random.PRNGKey(0)
    k1, k2, k3, k4, k5, k6, k7, k8, k9 = jax.random.split(key, 9)

    # Small embedding batch consistent with the module's forward.
    B, D = 8, 32
    anchor = jax.random.normal(k1, (B, D), dtype=jnp.float32)
    positive = jax.random.normal(k2, (B, D), dtype=jnp.float32)
    negative = jax.random.normal(k3, (B, D), dtype=jnp.float32)

    loss = triplet_loss_cosine(anchor, positive, negative)
    jax.block_until_ready(loss)
    ref = _reference(anchor, positive, negative)
    assert jnp.allclose(loss, ref, atol=1e-5, rtol=1e-5), (loss, ref)

    # Tiled path: 2-way core split + ragged (padded / clamped) tail tile.
    B2, D2 = 20, 128
    a2 = jax.random.normal(k4, (B2, D2), dtype=jnp.float32)
    p2 = jax.random.normal(k5, (B2, D2), dtype=jnp.float32)
    n2 = jax.random.normal(k6, (B2, D2), dtype=jnp.float32)
    loss2 = triplet_loss_cosine(a2, p2, n2, tile_b=8)  # grid_b=3, nc=2, masked tail
    jax.block_until_ready(loss2)
    ref2 = _reference(a2, p2, n2)
    assert jnp.allclose(loss2, ref2, atol=1e-5, rtol=1e-5), (loss2, ref2)

    # bf16 inputs (dtype-aware tiling; f32 math in-kernel).
    B3, D3 = 64, 128
    a3 = jax.random.normal(k7, (B3, D3), dtype=jnp.bfloat16)
    p3 = jax.random.normal(k8, (B3, D3), dtype=jnp.bfloat16)
    n3 = jax.random.normal(k9, (B3, D3), dtype=jnp.bfloat16)
    loss3 = triplet_loss_cosine(a3, p3, n3)
    jax.block_until_ready(loss3)
    ref3 = _reference(a3, p3, n3)
    assert jnp.allclose(loss3, ref3, atol=1e-5, rtol=1e-5), (loss3, ref3)

    print("KERNEL_OK")
</pallas_src>

<mosaic_0001>
module attributes {stable_mosaic.version = 11 : i64} {
  func.func @_triplet_loss_kernel(%arg0: i32, %arg1: i32, %arg2: memref<8x32xf32, #tpu.memory_space<vmem>>, %arg3: memref<8x32xf32, #tpu.memory_space<vmem>>, %arg4: memref<8x32xf32, #tpu.memory_space<vmem>>, %arg5: memref<1x1xf32, #tpu.memory_space<smem>>, %arg6: memref<8x1xf32, #tpu.memory_space<vmem>>) attributes {dimension_semantics = [#tpu.dimension_semantics<parallel>, #tpu.dimension_semantics<arbitrary>], iteration_bounds = array<i64: 1, 1>, scalar_prefetch = 0 : i64, scratch_operands = 1 : i64, tpu.core_type = #tpu.core_type<tc>, window_params = [{transform_indices = @transform_0, window_bounds = array<i64: 8, 32>}, {transform_indices = @transform_1, window_bounds = array<i64: 8, 32>}, {transform_indices = @transform_2, window_bounds = array<i64: 8, 32>}, {transform_indices = @transform_3, window_bounds = array<i64: 1, 1>}]} {
    %c0_i32 = arith.constant 0 : i32
    %0 = arith.cmpi eq, %arg1, %c0_i32 : i32
    %1 = arith.extui %0 : i1 to i32
    %c0_i32_0 = arith.constant 0 : i32
    %2 = arith.cmpi ne, %1, %c0_i32_0 : i32
    scf.if %2 {
      %cst_22 = arith.constant 0.000000e+00 : f32
      %46 = vector.broadcast %cst_22 : f32 to vector<8x1xf32>
      %c0_23 = arith.constant 0 : index
      %c0_24 = arith.constant 0 : index
      %47 = vector.load %arg6[%c0_23, %c0_24] : memref<8x1xf32, #tpu.memory_space<vmem>>, vector<8x1xf32>
      tpu.vector_store %arg6[%c0_23, %c0_24], %46 {strides = array<i32>} : memref<8x1xf32, #tpu.memory_space<vmem>>, vector<8x1xf32>,
      %cst_25 = arith.constant 0.000000e+00 : f32
      %c0_26 = arith.constant 0 : index
      %c0_27 = arith.constant 0 : index
      %48 = memref.load %arg5[%c0_26, %c0_27] : memref<1x1xf32, #tpu.memory_space<smem>>
      memref.store %cst_25, %arg5[%c0_26, %c0_27] : memref<1x1xf32, #tpu.memory_space<smem>>
    } else {
    }
    %c0 = arith.constant 0 : index
    %c0_1 = arith.constant 0 : index
    %3 = vector.load %arg2[%c0, %c0_1] : memref<8x32xf32, #tpu.memory_space<vmem>>, vector<8x32xf32>
    %c0_2 = arith.constant 0 : index
    %c0_3 = arith.constant 0 : index
    %4 = vector.load %arg3[%c0_2, %c0_3] : memref<8x32xf32, #tpu.memory_space<vmem>>, vector<8x32xf32>
    %c0_4 = arith.constant 0 : index
    %c0_5 = arith.constant 0 : index
    %5 = vector.load %arg4[%c0_4, %c0_5] : memref<8x32xf32, #tpu.memory_space<vmem>>, vector<8x32xf32>
    %6 = arith.mulf %3, %3 : vector<8x32xf32>
    %cst = arith.constant dense<0.000000e+00> : vector<8xf32>
    %7 = vector.multi_reduction <add>, %6, %cst [1] : vector<8x32xf32> to vector<8xf32>
    %8 = vector.shape_cast %7 : vector<8xf32> to vector<8x1xf32>
    %9 = arith.mulf %4, %4 : vector<8x32xf32>
    %cst_6 = arith.constant dense<0.000000e+00> : vector<8xf32>
    %10 = vector.multi_reduction <add>, %9, %cst_6 [1] : vector<8x32xf32> to vector<8xf32>
    %11 = vector.shape_cast %10 : vector<8xf32> to vector<8x1xf32>
    %12 = arith.mulf %5, %5 : vector<8x32xf32>
    %cst_7 = arith.constant dense<0.000000e+00> : vector<8xf32>
    %13 = vector.multi_reduction <add>, %12, %cst_7 [1] : vector<8x32xf32> to vector<8xf32>
    %14 = vector.shape_cast %13 : vector<8xf32> to vector<8x1xf32>
    %15 = arith.mulf %3, %4 : vector<8x32xf32>
    %cst_8 = arith.constant dense<0.000000e+00> : vector<8xf32>
    %16 = vector.multi_reduction <add>, %15, %cst_8 [1] : vector<8x32xf32> to vector<8xf32>
    %17 = vector.shape_cast %16 : vector<8xf32> to vector<8x1xf32>
    %18 = arith.mulf %3, %5 : vector<8x32xf32>
    %cst_9 = arith.constant dense<0.000000e+00> : vector<8xf32>
    %19 = vector.multi_reduction <add>, %18, %cst_9 [1] : vector<8x32xf32> to vector<8xf32>
    %20 = vector.shape_cast %19 : vector<8xf32> to vector<8x1xf32>
    %cst_10 = arith.constant 1.000000e-16 : f32
    %21 = vector.broadcast %cst_10 : f32 to vector<8x1xf32>
    %22 = arith.maximumf %8, %21 : vector<8x1xf32>
    %cst_11 = arith.constant 1.000000e-16 : f32
    %23 = vector.broadcast %cst_11 : f32 to vector<8x1xf32>
    %24 = arith.maximumf %11, %23 : vector<8x1xf32>
    %25 = arith.mulf %22, %24 : vector<8x1xf32>
    %26 = math.rsqrt %25 : vector<8x1xf32>
    %27 = arith.mulf %17, %26 : vector<8x1xf32>
    %cst_12 = arith.constant 1.000000e-16 : f32
    %28 = vector.broadcast %cst_12 : f32 to vector<8x1xf32>
    %29 = arith.maximumf %8, %28 : vector<8x1xf32>
    %cst_13 = arith.constant 1.000000e-16 : f32
    %30 = vector.broadcast %cst_13 : f32 to vector<8x1xf32>
    %31 = arith.maximumf %14, %30 : vector<8x1xf32>
    %32 = arith.mulf %29, %31 : vector<8x1xf32>
    %33 = math.rsqrt %32 : vector<8x1xf32>
    %34 = arith.mulf %20, %33 : vector<8x1xf32>
    %35 = arith.subf %34, %27 : vector<8x1xf32>
    %cst_14 = arith.constant 0.699999988 : f32
    %36 = vector.broadcast %cst_14 : f32 to vector<8x1xf32>
    %37 = arith.addf %35, %36 : vector<8x1xf32>
    %cst_15 = arith.constant 0.000000e+00 : f32
    %38 = vector.broadcast %cst_15 : f32 to vector<8x1xf32>
    %39 = arith.maximumf %37, %38 : vector<8x1xf32>
    %c0_16 = arith.constant 0 : index
    %c0_17 = arith.constant 0 : index
    %40 = vector.load %arg6[%c0_16, %c0_17] : memref<8x1xf32, #tpu.memory_space<vmem>>, vector<8x1xf32>
    %41 = arith.addf %40, %39 : vector<8x1xf32>
    %c0_18 = arith.constant 0 : index
    %c0_19 = arith.constant 0 : index
    %42 = vector.load %arg6[%c0_18, %c0_19] : memref<8x1xf32, #tpu.memory_space<vmem>>, vector<8x1xf32>
    tpu.vector_store %arg6[%c0_18, %c0_19], %41 {strides = array<i32>} : memref<8x1xf32, #tpu.memory_space<vmem>>, vector<8x1xf32>,
    %c0_i32_20 = arith.constant 0 : i32
    %43 = arith.cmpi eq, %arg1, %c0_i32_20 : i32
    %44 = arith.extui %43 : i1 to i32
    %c0_i32_21 = arith.constant 0 : i32
    %45 = arith.cmpi ne, %44, %c0_i32_21 : i32
    scf.if %45 {
      %c0_22 = arith.constant 0 : index
      %c0_23 = arith.constant 0 : index
      %46 = vector.load %arg6[%c0_22, %c0_23] : memref<8x1xf32, #tpu.memory_space<vmem>>, vector<8x1xf32>
      %47 = vector.shape_cast %46 : vector<8x1xf32> to vector<1x8x1xf32>
      %cst_24 = arith.constant dense<0.000000e+00> : vector<1xf32>
      %48 = vector.multi_reduction <add>, %47, %cst_24 [1, 2] : vector<1x8x1xf32> to vector<1xf32>
      %49 = vector.shape_cast %48 : vector<1xf32> to vector<1x1x1xf32>
      %50 = vector.extract %49[0, 0, 0] : f32 from vector<1x1x1xf32>
      %c0_25 = arith.constant 0 : index
      %c0_26 = arith.constant 0 : index
      %51 = memref.load %arg5[%c0_25, %c0_26] : memref<1x1xf32, #tpu.memory_space<smem>>
      memref.store %50, %arg5[%c0_25, %c0_26] : memref<1x1xf32, #tpu.memory_space<smem>>
    } else {
    }
    return
  }
  func.func @transform_0(%arg0: i32, %arg1: i32) -> (i32, i32) {
    %c1_i32 = arith.constant 1 : i32
    %0 = arith.muli %arg0, %c1_i32 : i32
    %1 = arith.addi %0, %arg1 : i32
    %c0_i32 = arith.constant 0 : i32
    %2 = arith.minsi %1, %c0_i32 : i32
    %c0_i32_0 = arith.constant 0 : i32
    %c0_i32_1 = arith.constant 0 : i32
    return %2, %c0_i32_0 : i32, i32
  }
  func.func @transform_1(%arg0: i32, %arg1: i32) -> (i32, i32) {
    %c1_i32 = arith.constant 1 : i32
    %0 = arith.muli %arg0, %c1_i32 : i32
    %1 = arith.addi %0, %arg1 : i32
    %c0_i32 = arith.constant 0 : i32
    %2 = arith.minsi %1, %c0_i32 : i32
    %c0_i32_0 = arith.constant 0 : i32
    %c0_i32_1 = arith.constant 0 : i32
    return %2, %c0_i32_0 : i32, i32
  }
  func.func @transform_2(%arg0: i32, %arg1: i32) -> (i32, i32) {
    %c1_i32 = arith.constant 1 : i32
    %0 = arith.muli %arg0, %c1_i32 : i32
    %1 = arith.addi %0, %arg1 : i32
    %c0_i32 = arith.constant 0 : i32
    %2 = arith.minsi %1, %c0_i32 : i32
    %c0_i32_0 = arith.constant 0 : i32
    %c0_i32_1 = arith.constant 0 : i32
    return %2, %c0_i32_0 : i32, i32
  }
  func.func @transform_3(%arg0: i32, %arg1: i32) -> (i32, i32) {
    %c0_i32 = arith.constant 0 : i32
    %c0_i32_0 = arith.constant 0 : i32
    return %arg0, %c0_i32 : i32, i32
  }
}

</mosaic_0001>

<bundles_post_ra>
// kernel: tpu_custom_call.1
= control target key start
LH: loop header
LB: loop body
LE: loop exit
PB: predicated region body
PF: predicated region fallthrough
CT: control target
= control target key end

     0   :  { %8 = vsyncpa [#allocation4], 0  ;;  %s327_s0 = inlined_call_operand.hbm [shape: f32[8,32], index: 0, kind: input, shape index: {}]   ;;  %s328_s1 = inlined_call_operand.hbm [shape: f32[8,32], index: 1, kind: input, shape index: {}]   ;;  %s329_s2 = inlined_call_operand.hbm [shape: f32[8,32], index: 2, kind: input, shape index: {}]   ;;  %s330_s3 = inlined_call_operand.hbm [shape: f32[1,1], index: 3, kind: output, shape index: {}]  }
   0x1   :  { %9 = vsyncpa [#allocation7], 0  ;;  %s37_s14 = sshll.u32 %s328_s1, 4  ;;  %s38_s14 = int_to_ptr.hbm [resolvable:$true] %s37_s14 }
   0x2   :  { %10 = vsyncpa [#allocation5], 0  ;;  %s287_s15 = smov [#allocation6]   ;;  %s21_s19 = sshll.u32 %s327_s0, 4  ;;  %s22_s19 = int_to_ptr.hbm [resolvable:$true] %s21_s19 }
   0x3   :  { %s39_s16 = sshll.u32 %s287_s15, 4  ;;  %s288_s20 = smov [#allocation3]   ;;  %s40_s16 = int_to_ptr.vmem [resolvable:$true] %s39_s16 }
   0x4   :  { %42 = dma.hbm_to_vmem [thread:$0]  %s38_s14, 128, %s40_s16, [#allocation7]  }
   0x5   :  { %s23_s21 = sshll.u32 %s288_s20, 4  ;;  %s53_s24 = sshll.u32 %s329_s2, 4  ;;  %s24_s21 = int_to_ptr.vmem [resolvable:$true] %s23_s21  ;;  %s54_s24 = int_to_ptr.hbm [resolvable:$true] %s53_s24 }
   0x6   :  { %26 = dma.hbm_to_vmem [thread:$0]  %s22_s19, 128, %s24_s21, [#allocation4]  }
   0x7   :  { %s289_s1 = smov [#allocation8]  }
   0x8   :  { %s55_s25 = sshll.u32 %s289_s1, 4  ;;  %s56_s25 = int_to_ptr.vmem [resolvable:$true] %s55_s25 }
   0x9   :  { %58 = dma.hbm_to_vmem [thread:$0]  %s54_s24, 128, %s56_s25, [#allocation7]  }
   0xa   :  { %281 = dma.done.wait [#allocation4], 128  }
   0xb   :  { %282 = vsyncadd [#allocation4], 4294967168 }
   0xc   :  { %283 = dma.done.wait [#allocation7], 256  }
   0xd   :  { %284 = vsyncadd [#allocation7], 4294967040  ;;  %v90_v0 = vld [vmem:[#allocation8] sm:$0xff]  ;;  %vm92_vm0 = vcmask 261120   ;;  %v88_v1 = vld [vmem:[#allocation3] sm:$0xff]  ;;  %vm84_vm1 = vcmask 7168  }
   0xe   :  { %v100_v2 = vmul.f32 %v90_v0, %v90_v0  ;;  %v91_v3 = vmul.f32 %v88_v1, %v88_v1  ;;  %v108_v4 = vmul.f32 %v90_v0, %v88_v1  ;;  %v89_v5 = vld [vmem:[#allocation6] sm:$0xff]  ;;  %v290_v13 = vmov 0.0   ;;  %s167_s26 = sshll.u32 %s330_s3, 4  ;;  %s291_s28 = smov [#allocation9]   ;;  %s168_s26 = int_to_ptr.hbm [resolvable:$true] %s167_s26 }
   0xf   :  { %v96_v9 = vmul.f32 %v89_v5, %v89_v5  ;;  %v104_v10 = vmul.f32 %v89_v5, %v88_v1  ;;  %85 = vst.msk [vmem:[#allocation2] sm:$0xff] %vm84_vm1, %v290_v13 }
  0x10   :  { %v101_v6 = vsel %vm92_vm0, %v100_v2, 0.0  ;;  %v93_v7 = vsel %vm92_vm0, %v91_v3, 0.0  ;;  %v109_v8 = vsel %vm92_vm0, %v108_v4, 0.0 }
  0x11   :  { %102 = vadd.xlane.f32.xlu1 %v101_v6  ;;  %94 = vadd.xlane.f32.xlu0 %v93_v7  ;;  %v97_v11 = vsel %vm92_vm0, %v96_v9, 0.0  ;;  %v105_v12 = vsel %vm92_vm0, %v104_v10, 0.0 }
  0x12   :  { %110 = vadd.xlane.f32.xlu2 %v109_v8 }
  0x16   :  { %v142_v42 = vld [vmem:[#allocation2] sm:$0xff] }
  0x19   :  { %98 = vadd.xlane.f32.xlu0 %v97_v11  ;;  %106 = vadd.xlane.f32.xlu1 %v105_v12 }
  0x84   :  { %v103_v14 = vpop.xlane.xlu1 %102  ;;  %v95_v15 = vpop.xlane.xlu0 %94 }
  0x85   :  { %v126_v16 = vmax.f32 %v103_v14, 1e-16  ;;  %v112_v17 = vmax.f32 %v95_v15, 1e-16  ;;  %v111_v33 = vpop.xlane.xlu2 %110 }
  0x87   :  { %v127_v18 = vmul.f32 %v126_v16, %v112_v17 }
  0x89   :  { %193 = vrsqrt.f32 %v127_v18  ;;  %vm134_vm3 = vweird.f32 %v127_v18 }
  0x8c   :  { %v99_v19 = vpop.xlane.xlu0 %98  ;;  %v107_v35 = vpop.xlane.xlu1 %106 }
  0x8d   :  { %v113_v20 = vmax.f32 %v99_v19, 1e-16 }
  0x8f   :  { %v194_v21 = vpop.eup %193  ;;  %v114_v22 = vmul.f32 %v113_v20, %v112_v17 }
  0x90   :  { %v129_v23 = vmul.f32 %v194_v21, %v127_v18  ;;  %vm135_vm2 = vweird.f32 %v194_v21 }
  0x91   :  { %195 = vrsqrt.f32 %v114_v22  ;;  %vm136_vm5 = vmor %vm134_vm3, %vm135_vm2  ;;  %vm121_vm6 = vweird.f32 %v114_v22 }
  0x92   :  { %v130_v24 = vmul.f32 %v194_v21, %v129_v23 }
  0x94   :  { %v131_v25 = vmul.f32 0.5, %v130_v24 }
  0x96   :  { %v132_v28 = vsub.f32 1.5, %v131_v25 }
  0x97   :  { %v196_v26 = vpop.eup %195 }
  0x98   :  { %v116_v27 = vmul.f32 %v196_v26, %v114_v22  ;;  %v133_v30 = vmul.f32 %v194_v21, %v132_v28  ;;  %vm122_vm4 = vweird.f32 %v196_v26 }
  0x99   :  { %vm123_vm7 = vmor %vm121_vm6, %vm122_vm4 }
  0x9a   :  { %v117_v29 = vmul.f32 %v196_v26, %v116_v27  ;;  %v137_v34 = vsel %vm136_vm5, %v194_v21, %v133_v30 }
  0x9b   :  { %v138_v38 = vmul.f32 %v137_v34, %v111_v33 }
  0x9c   :  { %v118_v31 = vmul.f32 0.5, %v117_v29 }
  0x9e   :  { %v119_v32 = vsub.f32 1.5, %v118_v31 }
  0xa0   :  { %v120_v36 = vmul.f32 %v196_v26, %v119_v32 }
  0xa2   :  { %v124_v37 = vsel %vm123_vm7, %v196_v26, %v120_v36 }
  0xa3   :  { %v125_v39 = vmul.f32 %v124_v37, %v107_v35 }
  0xa5   :  { %v139_v40 = vsub.f32 %v138_v38, %v125_v39 }
  0xa7   :  { %v140_v41 = vadd.f32 0.7, %v139_v40 }
  0xa9   :  { %v141_v43 = vmax.f32 %v140_v41, 0.0 }
  0xab   :  { %v143_v44 = vadd.f32 %v142_v42, %v141_v43 }
  0xad   :  { %145 = vst.msk [vmem:[#allocation2] sm:$0xff] %vm84_vm1, %v143_v44 }
  0xb4   :  { %v149_v45 = vld [vmem:[#allocation2] sm:$0xff] }
  0xb5   :  { %v150_v46 = vsel %vm84_vm1, %v149_v45, 0.0 }
  0xb6   :  { %151 = vadd.xlane.f32.xlu2 %v150_v46 }
 0x129   :  { %v152_v47 = vpop.xlane.xlu2 %151 }
 0x12a   :  { %v153_v48 = vrot.slane %v152_v47, 4 }
 0x12c   :  { %v154_v49 = vadd.f32 %v153_v48, %v152_v47 }
 0x12e   :  { %v155_v50 = vrot.slane %v154_v49, 2 }
 0x130   :  { %v156_v51 = vadd.f32 %v155_v50, %v154_v49 }
 0x132   :  { %v157_v52 = vrot.slane %v156_v51, 1 }
 0x134   :  { %v158_v53 = vadd.f32 %v157_v52, %v156_v51 }
 0x136   :  { %185 = vpush %v158_v53 }
 0x167   :  { %s186_s27 = spop %185 }
 0x168   :  { %161 = sst [smem:[#allocation9]] %s186_s27 }
 0x169   :  { %170 = dma.smem_to_hbm %s291_s28, 16, %s168_s26, [#allocation5]  }
 0x16a   :  { %285 = dma.done.wait [#allocation5], 16  }
 0x16b   :  { %286 = vsyncadd [#allocation5], 4294967280 }
 0x16c   :  { %175 = sfence }
 0x16d   :  { %176 = vsyncpa [#allocation4], 1 }
 0x16e   :  { %177 = vsyncpa [#allocation7], 1 }
 0x16f   :  { %178 = vsyncpa [#allocation5], 1 }

</bundles_post_ra>
